<compile_context>
chip_gen: v6e
topology: v6e:2x2x1
jax: 0.10.0
libtpu: 0.0.40
codegen_flags: <defaults>
</compile_context>

<pallas_src>
import functools

import jax
import jax.numpy as jnp
from jax import lax
from jax.experimental import pallas as pl
from jax.experimental.pallas import tpu as pltpu


def _round_up(x, m):
    return ((x + m - 1) // m) * m


def _opl_kernel(feat_ref, lab_col_ref, lab_row_ref, out_ref, acc_ref, *,
                b_real, d_real, td, mask_d, compute_dtype):
    # feat_ref:    [Bp, TD] VMEM  (k-th D chunk; rows >= b_real and, on the
    #                              last chunk, lanes >= d_real hold garbage)
    # lab_col_ref: [Bp, 1]  i32 VMEM   (rows >= b_real: garbage, masked later)
    # lab_row_ref: [1, Bp]  i32 VMEM
    # out_ref:     [3]      f32 SMEM   (loss, pos_mean, neg_mean)
    # acc_ref:     [Bp, Bp] f32 VMEM scratch (raw gram accumulator)
    k = pl.program_id(0)

    @pl.when(k == 0)
    def _init():
        acc_ref[...] = jnp.zeros_like(acc_ref)

    f = feat_ref[...]  # [Bp, TD]
    if mask_d:
        # Zero out lanes past the real feature dim (only the last chunk is
        # ragged; for full chunks this select is all-true VPU filler).
        lane = lax.broadcasted_iota(jnp.int32, f.shape, 1)
        f = jnp.where(k * td + lane < d_real, f, jnp.zeros_like(f))
    fc = f.astype(compute_dtype)

    # Raw gram: contract along D of both operands directly (no transpose).
    acc_ref[...] += lax.dot_general(
        fc, fc,
        dimension_numbers=(((1,), (1,)), ((), ())),
        preferred_element_type=jnp.float32,
    )

    @pl.when(k == pl.num_programs(0) - 1)
    def _finalize():
        g = acc_ref[...]                                   # [Bp, Bp] raw gram
        bp = g.shape[0]

        row = lax.broadcasted_iota(jnp.int32, (bp, bp), 0)
        col = lax.broadcasted_iota(jnp.int32, (bp, bp), 1)
        eye = row == col
        valid = (row < b_real) & (col < b_real)            # drop padded rows/cols

        # Squared norms are the diagonal of the accumulated gram; extract it
        # in both layouts (column and row vector) via masked reductions so no
        # transpose is needed.  Padded rows may yield NaN/Inf here; they are
        # excluded by `valid` below (select, not arithmetic, so no poisoning).
        diag_only = jnp.where(eye, g, 0.0)
        ss_col = jnp.sum(diag_only, axis=1, keepdims=True)  # [Bp, 1]
        ss_row = jnp.sum(diag_only, axis=0, keepdims=True)  # [1, Bp]

        # 1/max(||f||, 1e-12) == rsqrt(max(ss, 1e-24))  (matches F.normalize eps)
        inv_col = lax.rsqrt(jnp.maximum(ss_col, 1e-24))
        inv_row = lax.rsqrt(jnp.maximum(ss_row, 1e-24))

        scaled = g * inv_col * inv_row                     # normalized cosine gram

        same = lab_col_ref[...] == lab_row_ref[...]        # lane-wise VPU compare
        pos_m = same & jnp.logical_not(eye) & valid        # same class, off-diagonal
        neg_m = jnp.logical_not(same) & valid              # different class

        pos_sum = jnp.sum(jnp.where(pos_m, scaled, 0.0))
        neg_sum = jnp.sum(jnp.where(neg_m, jnp.abs(scaled), 0.0))
        pos_cnt = jnp.sum(pos_m.astype(jnp.float32))
        neg_cnt = jnp.sum(neg_m.astype(jnp.float32))

        pos_mean = pos_sum / (pos_cnt + 1e-6)
        neg_mean = neg_sum / (neg_cnt + 1e-6)

        out_ref[0] = 1.0 - pos_mean + neg_mean
        out_ref[1] = pos_mean
        out_ref[2] = neg_mean


def orthogonal_projection_loss(features, labels, *, use_bf16=False, max_chunk=None):
    """features: [B, D] float, labels: [B] int.  Returns (loss, pos_mean, neg_mean).

    use_bf16: cast the MXU contraction operands to bf16 (f32 accumulate);
              ~4x MXU throughput at ~1e-2 relative accuracy.
    max_chunk: optional cap on the D-chunk size (testing / VMEM tuning).
    """
    features = jnp.asarray(features)
    if features.dtype not in (jnp.float32, jnp.bfloat16):
        features = features.astype(jnp.float32)
    labels = jnp.asarray(labels, jnp.int32)
    B, D = features.shape

    # Gram tile row/col size: 128 keeps the lane dim aligned and matches the
    # MXU exactly on v5e; do NOT pad to 256 on v6e/v7x (quadruples wasted FLOPs).
    Bp = _round_up(max(B, 1), 128)
    itemsize = features.dtype.itemsize

    # D-chunk size: as large as an ~8 MiB double-buffered-chunk budget allows
    # (amortizes per-step overhead), multiple of 128, capped at 4096.
    chunk_budget = 8 << 20
    td_cap = max(128, ((chunk_budget // (2 * Bp * itemsize)) // 128) * 128)
    TD = min(_round_up(max(D, 1), 128), td_cap, 4096)
    if max_chunk is not None:
        TD = max(128, min(TD, _round_up(max_chunk, 128)))
    nk = -(-D // TD)                       # ceil(D / TD)
    mask_d = (D % TD) != 0                 # ragged last chunk -> in-kernel lane mask

    # Labels in both layouts (cheap host reshapes of a tiny int vector).
    lab_col = labels.reshape(B, 1)
    lab_row = labels.reshape(1, B)

    # Explicit VMEM budget: gram accumulator + double-buffered feature chunk
    # + headroom for label buffers / internal scratch.  Covers v5e's 16 MiB
    # default scoped limit when TD is large.
    acc_bytes = Bp * Bp * 4
    chunk_bytes = Bp * TD * itemsize
    vmem_limit = int(acc_bytes + 2 * chunk_bytes + (4 << 20))

    compute_dtype = jnp.bfloat16 if use_bf16 else features.dtype

    kernel = functools.partial(
        _opl_kernel,
        b_real=B, d_real=D, td=TD, mask_d=mask_d, compute_dtype=compute_dtype,
    )

    out = pl.pallas_call(
        kernel,
        out_shape=jax.ShapeDtypeStruct((3,), jnp.float32),
        grid_spec=pltpu.PrefetchScalarGridSpec(
            num_scalar_prefetch=0,
            grid=(nk,),
            in_specs=[
                pl.BlockSpec((Bp, TD), lambda k: (0, k)),   # D-chunked features
                pl.BlockSpec((Bp, 1), lambda k: (0, 0)),    # labels as column
                pl.BlockSpec((1, Bp), lambda k: (0, 0)),    # labels as row
            ],
            out_specs=pl.BlockSpec(memory_space=pltpu.SMEM),
            scratch_shapes=[pltpu.VMEM((Bp, Bp), jnp.float32)],
        ),
        compiler_params=pltpu.CompilerParams(
            dimension_semantics=("arbitrary",),             # D axis is a reduction
            vmem_limit_bytes=vmem_limit,
        ),
        cost_estimate=pl.CostEstimate(
            flops=2 * Bp * Bp * (nk * TD),
            transcendentals=2 * Bp,
            bytes_accessed=B * D * itemsize + 2 * B * 4 + 3 * 4,
        ),
    )(features, lab_col, lab_row)

    return out[0], out[1], out[2]


def _reference(features, labels):
    # Pure-JAX mirror of the PyTorch forward, for sanity checking.
    f = features.astype(jnp.float32)
    norm = jnp.sqrt(jnp.sum(f * f, axis=1, keepdims=True))
    fn = f / jnp.maximum(norm, 1e-12)
    lab = labels.reshape(-1, 1)
    mask = lab == lab.T
    eye = jnp.eye(mask.shape[0], dtype=bool)
    mask_pos = jnp.where(eye, 0.0, mask.astype(jnp.float32))
    mask_neg = (~mask).astype(jnp.float32)
    dot = fn @ fn.T
    pos = jnp.sum(mask_pos * dot) / (jnp.sum(mask_pos) + 1e-6)
    neg = jnp.sum(jnp.abs(mask_neg * dot)) / (jnp.sum(mask_neg) + 1e-6)
    return 1.0 - pos + neg, pos, neg


def _check(B, D, n_classes, key, use_bf16=False, max_chunk=None,
           atol=1e-5, rtol=1e-4):
    kf, kl = jax.random.split(key)
    features = jax.random.normal(kf, (B, D), dtype=jnp.float32)
    labels = jax.random.randint(kl, (B,), 0, n_classes, dtype=jnp.int32)

    loss, pos_mean, neg_mean = orthogonal_projection_loss(
        features, labels, use_bf16=use_bf16, max_chunk=max_chunk)
    jax.block_until_ready((loss, pos_mean, neg_mean))

    ref_loss, ref_pos, ref_neg = _reference(features, labels)
    assert jnp.allclose(loss, ref_loss, atol=atol, rtol=rtol), (loss, ref_loss)
    assert jnp.allclose(pos_mean, ref_pos, atol=atol, rtol=rtol), (pos_mean, ref_pos)
    assert jnp.allclose(neg_mean, ref_neg, atol=atol, rtol=rtol), (neg_mean, ref_neg)


if __name__ == "__main__":
    key = jax.random.PRNGKey(0)
    k1, k2, k3 = jax.random.split(key, 3)

    # Small shape matching the module's expected inputs (batch of feature vecs).
    _check(B=8, D=32, n_classes=3, key=k1)
    # Ragged batch + ragged multi-chunk D: exercises the unpadded-input path,
    # the in-kernel lane mask, and the multi-step reduction grid.
    _check(B=13, D=1000, n_classes=4, key=k2, max_chunk=256)
    # Optional bf16 MXU path (looser tolerance).
    _check(B=16, D=256, n_classes=3, key=k3, use_bf16=True, atol=2e-2, rtol=2e-2)

    print("KERNEL_OK")
</pallas_src>

<mosaic_0001>
module attributes {stable_mosaic.version = 11 : i64} {
  func.func @_opl_kernel(%arg0: i32, %arg1: memref<128x128xf32, #tpu.memory_space<vmem>>, %arg2: memref<128x1xi32, #tpu.memory_space<vmem>>, %arg3: memref<1x128xi32, #tpu.memory_space<vmem>>, %arg4: memref<3xf32, #tpu.memory_space<smem>>, %arg5: memref<128x128xf32, #tpu.memory_space<vmem>>) attributes {dimension_semantics = [#tpu.dimension_semantics<arbitrary>], iteration_bounds = array<i64: 1>, scalar_prefetch = 0 : i64, scratch_operands = 1 : i64, tpu.core_type = #tpu.core_type<tc>, window_params = [{transform_indices = @transform_0, window_bounds = array<i64: 128, 128>}, {transform_indices = @transform_1, window_bounds = array<i64: 128, 1>}, {transform_indices = @transform_2, window_bounds = array<i64: 1, 128>}, {transform_indices = @transform_3, window_bounds = array<i64: 3>}]} {
    %c0_i32 = arith.constant 0 : i32
    %0 = arith.cmpi eq, %arg0, %c0_i32 : i32
    %1 = arith.extui %0 : i1 to i32
    %c0_i32_0 = arith.constant 0 : i32
    %2 = arith.cmpi ne, %1, %c0_i32_0 : i32
    scf.if %2 {
      %cst_9 = arith.constant 0.000000e+00 : f32
      %19 = vector.broadcast %cst_9 : f32 to vector<128x128xf32>
      %c0_10 = arith.constant 0 : index
      %c0_11 = arith.constant 0 : index
      %20 = vector.load %arg5[%c0_10, %c0_11] : memref<128x128xf32, #tpu.memory_space<vmem>>, vector<128x128xf32>
      tpu.vector_store %arg5[%c0_10, %c0_11], %19 {strides = array<i32>} : memref<128x128xf32, #tpu.memory_space<vmem>>, vector<128x128xf32>,
    } else {
    }
    %c0 = arith.constant 0 : index
    %c0_1 = arith.constant 0 : index
    %3 = vector.load %arg1[%c0, %c0_1] : memref<128x128xf32, #tpu.memory_space<vmem>>, vector<128x128xf32>
    %4 = tpu.iota {dimensions = array<i32: 1>} : vector<128x128xi32>
    %c128_i32 = arith.constant 128 : i32
    %5 = arith.muli %arg0, %c128_i32 : i32
    %6 = vector.broadcast %5 : i32 to vector<128x128xi32>
    %7 = arith.addi %6, %4 : vector<128x128xi32>
    %c32_i32 = arith.constant 32 : i32
    %8 = vector.broadcast %c32_i32 : i32 to vector<128x128xi32>
    %9 = arith.cmpi slt, %7, %8 : vector<128x128xi32>
    %cst = arith.constant 0.000000e+00 : f32
    %10 = vector.broadcast %cst : f32 to vector<128x128xf32>
    %11 = arith.select %9, %3, %10 : vector<128x128xi1>, vector<128x128xf32>
    %c0_2 = arith.constant 0 : index
    %c0_3 = arith.constant 0 : index
    %12 = vector.load %arg5[%c0_2, %c0_3] : memref<128x128xf32, #tpu.memory_space<vmem>>, vector<128x128xf32>
    %cst_4 = arith.constant dense<0.000000e+00> : vector<128x128xf32>
    %13 = tpu.matmul %11, %11, %cst_4 {dimension_numbers = #tpu.dot_dimension_numbers<[1], [1], [0], [0], [0, 0, 1, 0], [], []>} : vector<128x128xf32>, vector<128x128xf32>, vector<128x128xf32> -> vector<128x128xf32>
    %14 = arith.addf %12, %13 : vector<128x128xf32>
    %c0_5 = arith.constant 0 : index
    %c0_6 = arith.constant 0 : index
    %15 = vector.load %arg5[%c0_5, %c0_6] : memref<128x128xf32, #tpu.memory_space<vmem>>, vector<128x128xf32>
    tpu.vector_store %arg5[%c0_5, %c0_6], %14 {strides = array<i32>} : memref<128x128xf32, #tpu.memory_space<vmem>>, vector<128x128xf32>,
    %c0_i32_7 = arith.constant 0 : i32
    %16 = arith.cmpi eq, %arg0, %c0_i32_7 : i32
    %17 = arith.extui %16 : i1 to i32
    %c0_i32_8 = arith.constant 0 : i32
    %18 = arith.cmpi ne, %17, %c0_i32_8 : i32
    scf.if %18 {
      %c0_9 = arith.constant 0 : index
      %c0_10 = arith.constant 0 : index
      %19 = vector.load %arg5[%c0_9, %c0_10] : memref<128x128xf32, #tpu.memory_space<vmem>>, vector<128x128xf32>
      %20 = tpu.iota {dimensions = array<i32: 0>} : vector<128x128xi32>
      %21 = tpu.iota {dimensions = array<i32: 1>} : vector<128x128xi32>
      %22 = arith.cmpi eq, %20, %21 : vector<128x128xi32>
      %c8_i32 = arith.constant 8 : i32
      %23 = vector.broadcast %c8_i32 : i32 to vector<128x128xi32>
      %24 = arith.cmpi slt, %20, %23 : vector<128x128xi32>
      %c8_i32_11 = arith.constant 8 : i32
      %25 = vector.broadcast %c8_i32_11 : i32 to vector<128x128xi32>
      %26 = arith.cmpi slt, %21, %25 : vector<128x128xi32>
      %27 = arith.andi %24, %26 : vector<128x128xi1>
      %cst_12 = arith.constant 0.000000e+00 : f32
      %28 = vector.broadcast %cst_12 : f32 to vector<128x128xf32>
      %29 = arith.select %22, %19, %28 : vector<128x128xi1>, vector<128x128xf32>
      %cst_13 = arith.constant dense<0.000000e+00> : vector<128xf32>
      %30 = vector.multi_reduction <add>, %29, %cst_13 [1] : vector<128x128xf32> to vector<128xf32>
      %31 = vector.shape_cast %30 : vector<128xf32> to vector<128x1xf32>
      %cst_14 = arith.constant dense<0.000000e+00> : vector<128xf32>
      %32 = vector.multi_reduction <add>, %29, %cst_14 [0] : vector<128x128xf32> to vector<128xf32>
      %33 = vector.shape_cast %32 : vector<128xf32> to vector<1x128xf32>
      %cst_15 = arith.constant 1.000000e-24 : f32
      %34 = vector.broadcast %cst_15 : f32 to vector<128x1xf32>
      %35 = arith.maximumf %31, %34 : vector<128x1xf32>
      %36 = math.rsqrt %35 : vector<128x1xf32>
      %cst_16 = arith.constant 1.000000e-24 : f32
      %37 = vector.broadcast %cst_16 : f32 to vector<1x128xf32>
      %38 = arith.maximumf %33, %37 : vector<1x128xf32>
      %39 = math.rsqrt %38 : vector<1x128xf32>
      %40 = vector.broadcast %36 : vector<128x1xf32> to vector<128x128xf32>
      %41 = arith.mulf %19, %40 : vector<128x128xf32>
      %42 = vector.broadcast %39 : vector<1x128xf32> to vector<128x128xf32>
      %43 = arith.mulf %41, %42 : vector<128x128xf32>
      %c0_17 = arith.constant 0 : index
      %c0_18 = arith.constant 0 : index
      %44 = vector.load %arg2[%c0_17, %c0_18] : memref<128x1xi32, #tpu.memory_space<vmem>>, vector<128x1xi32>
      %c0_19 = arith.constant 0 : index
      %c0_20 = arith.constant 0 : index
      %45 = vector.load %arg3[%c0_19, %c0_20] : memref<1x128xi32, #tpu.memory_space<vmem>>, vector<1x128xi32>
      %46 = vector.broadcast %44 : vector<128x1xi32> to vector<128x128xi32>
      %47 = vector.broadcast %45 : vector<1x128xi32> to vector<128x128xi32>
      %48 = arith.cmpi eq, %46, %47 : vector<128x128xi32>
      %cst_21 = arith.constant dense<true> : vector<128x128xi1>
      %49 = arith.xori %22, %cst_21 : vector<128x128xi1>
      %50 = arith.andi %48, %49 : vector<128x128xi1>
      %51 = arith.andi %50, %27 : vector<128x128xi1>
      %cst_22 = arith.constant dense<true> : vector<128x128xi1>
      %52 = arith.xori %48, %cst_22 : vector<128x128xi1>
      %53 = arith.andi %52, %27 : vector<128x128xi1>
      %cst_23 = arith.constant 0.000000e+00 : f32
      %54 = vector.broadcast %cst_23 : f32 to vector<128x128xf32>
      %55 = arith.select %51, %43, %54 : vector<128x128xi1>, vector<128x128xf32>
      %56 = vector.shape_cast %55 : vector<128x128xf32> to vector<1x128x128xf32>
      %cst_24 = arith.constant dense<0.000000e+00> : vector<1xf32>
      %57 = vector.multi_reduction <add>, %56, %cst_24 [1, 2] : vector<1x128x128xf32> to vector<1xf32>
      %58 = vector.shape_cast %57 : vector<1xf32> to vector<1x1x1xf32>
      %59 = vector.extract %58[0, 0, 0] : f32 from vector<1x1x1xf32>
      %60 = math.absf %43 : vector<128x128xf32>
      %cst_25 = arith.constant 0.000000e+00 : f32
      %61 = vector.broadcast %cst_25 : f32 to vector<128x128xf32>
      %62 = arith.select %53, %60, %61 : vector<128x128xi1>, vector<128x128xf32>
      %63 = vector.shape_cast %62 : vector<128x128xf32> to vector<1x128x128xf32>
      %cst_26 = arith.constant dense<0.000000e+00> : vector<1xf32>
      %64 = vector.multi_reduction <add>, %63, %cst_26 [1, 2] : vector<1x128x128xf32> to vector<1xf32>
      %65 = vector.shape_cast %64 : vector<1xf32> to vector<1x1x1xf32>
      %66 = vector.extract %65[0, 0, 0] : f32 from vector<1x1x1xf32>
      %67 = arith.extui %51 : vector<128x128xi1> to vector<128x128xi32>
      %68 = arith.sitofp %67 : vector<128x128xi32> to vector<128x128xf32>
      %69 = vector.shape_cast %68 : vector<128x128xf32> to vector<1x128x128xf32>
      %cst_27 = arith.constant dense<0.000000e+00> : vector<1xf32>
      %70 = vector.multi_reduction <add>, %69, %cst_27 [1, 2] : vector<1x128x128xf32> to vector<1xf32>
      %71 = vector.shape_cast %70 : vector<1xf32> to vector<1x1x1xf32>
      %72 = vector.extract %71[0, 0, 0] : f32 from vector<1x1x1xf32>
      %73 = arith.extui %53 : vector<128x128xi1> to vector<128x128xi32>
      %74 = arith.sitofp %73 : vector<128x128xi32> to vector<128x128xf32>
      %75 = vector.shape_cast %74 : vector<128x128xf32> to vector<1x128x128xf32>
      %cst_28 = arith.constant dense<0.000000e+00> : vector<1xf32>
      %76 = vector.multi_reduction <add>, %75, %cst_28 [1, 2] : vector<1x128x128xf32> to vector<1xf32>
      %77 = vector.shape_cast %76 : vector<1xf32> to vector<1x1x1xf32>
      %78 = vector.extract %77[0, 0, 0] : f32 from vector<1x1x1xf32>
      %cst_29 = arith.constant 9.99999997E-7 : f32
      %79 = arith.addf %72, %cst_29 : f32
      %80 = arith.divf %59, %79 : f32
      %cst_30 = arith.constant 9.99999997E-7 : f32
      %81 = arith.addf %78, %cst_30 : f32
      %82 = arith.divf %66, %81 : f32
      %cst_31 = arith.constant 1.000000e+00 : f32
      %83 = arith.subf %cst_31, %80 : f32
      %84 = arith.addf %83, %82 : f32
      %c0_32 = arith.constant 0 : index
      %85 = memref.load %arg4[%c0_32] : memref<3xf32, #tpu.memory_space<smem>>
      memref.store %84, %arg4[%c0_32] : memref<3xf32, #tpu.memory_space<smem>>
      %c1 = arith.constant 1 : index
      %86 = memref.load %arg4[%c1] : memref<3xf32, #tpu.memory_space<smem>>
      memref.store %80, %arg4[%c1] : memref<3xf32, #tpu.memory_space<smem>>
      %c2 = arith.constant 2 : index
      %87 = memref.load %arg4[%c2] : memref<3xf32, #tpu.memory_space<smem>>
      memref.store %82, %arg4[%c2] : memref<3xf32, #tpu.memory_space<smem>>
    } else {
    }
    return
  }
  func.func @transform_0(%arg0: i32) -> (i32, i32) {
    %c0_i32 = arith.constant 0 : i32
    %c0_i32_0 = arith.constant 0 : i32
    return %c0_i32, %arg0 : i32, i32
  }
  func.func @transform_1(%arg0: i32) -> (i32, i32) {
    %c0_i32 = arith.constant 0 : i32
    %c0_i32_0 = arith.constant 0 : i32
    %c0_i32_1 = arith.constant 0 : i32
    return %c0_i32, %c0_i32_0 : i32, i32
  }
  func.func @transform_2(%arg0: i32) -> (i32, i32) {
    %c0_i32 = arith.constant 0 : i32
    %c0_i32_0 = arith.constant 0 : i32
    %c0_i32_1 = arith.constant 0 : i32
    return %c0_i32, %c0_i32_0 : i32, i32
  }
  func.func @transform_3(%arg0: i32) -> i32 {
    %c0_i32 = arith.constant 0 : i32
    %c0_i32_0 = arith.constant 0 : i32
    return %c0_i32 : i32
  }
}

</mosaic_0001>

<bundles_post_ra>
// kernel: tpu_custom_call.1
= control target key start
LH: loop header
LB: loop body
LE: loop exit
PB: predicated region body
PF: predicated region fallthrough
CT: control target
= control target key end

     0   :  { %v51_v0 = vlaneseq  ;;  %s1413_s0 = inlined_call_operand.vmem [shape: f32[8,32], index: 0, kind: input, shape index: {}]   ;;  %s1414_s1 = inlined_call_operand.vmem [shape: s32[8,1], index: 1, kind: input, shape index: {}]   ;;  %s1415_s2 = inlined_call_operand.vmem [shape: s32[1,8], index: 2, kind: input, shape index: {}]   ;;  %s1416_s3 = inlined_call_operand.hbm [shape: f32[3], index: 3, kind: output, shape index: {}]  }
   0x1   :  { %v1107_v1 = vld [vmem:[%s1413_s0 + $0x78] sm:$0xff]  ;;  %v1116_v3 = vld [vmem:[%s1413_s0 + $0x70] sm:$0xff] }
   0x2   :  { %v1110_v2 = vand.u32 127, %v51_v0 }
   0x4   :  { %vm56_vm0 = vcmp.lt.s32.totalorder %v1110_v2, 32 }
   0x5   :  { %957 = vmatprep.subr.msk.mxu0 %vm56_vm0, %v1107_v1  ;;  %1013 = vmatprep.subr.msk.mxu1 %vm56_vm0, %v1107_v1 }
   0x6   :  { %8 = vsyncpa [#allocation4], 0  ;;  %958 = vmatpush3.xpose.msk.msra.mxu0 %vm56_vm0, %v1107_v1  ;;  %1029 = vmatpush3.xpose.msk.msra.mxu1 %vm56_vm0, %v1107_v1  ;;  %v43_v4 = vld [vmem:[%s1413_s0 + $0x40] sm:$0xff]  ;;  %v1147_v6 = vld [vmem:[%s1413_s0 + $0x68] sm:$0xff]  ;;  %v1080_v18 = vmov 0   ;;  %v1359_v19 = vshrl.u32 %v51_v0, 7 }
   0x7   :  { %959 = vmatprep.subr.msk.mxu0 %vm56_vm0, %v1116_v3  ;;  %1014 = vmatprep.subr.msk.mxu1 %vm56_vm0, %v1116_v3  ;;  %v1142_v5 = vld [vmem:[%s1413_s0] sm:$0xff]  ;;  %v1186_v8 = vld [vmem:[%s1413_s0 + $0x58] sm:$0xff]  ;;  %v45_v9 = vld [vmem:[%s1413_s0 + $0x50] sm:$0xff]  ;;  %s1083_s30 = smov [#allocation3]  }
   0x8   :  { %989 = vmatprep.mubr.msk.f32.mxu0 %vm56_vm0, %v1142_v5  ;;  %1001 = vmatprep.mubr.msk.f32.mxu1 %vm56_vm0, %v43_v4  ;;  %v1169_v7 = vld [vmem:[%s1413_s0 + $0x60] sm:$0xff]  ;;  %v44_v10 = vld [vmem:[%s1413_s0 + $0x48] sm:$0xff]  ;;  %v42_v11 = vld [vmem:[%s1413_s0 + $0x38] sm:$0xff]  ;;  %v287_v20 = vadd.s32 8, %v1359_v19  ;;  %vm302_vm2 = vcmp.eq.s32.totalorder %v1359_v19, %v1110_v2  ;;  %v289_v22 = vadd.s32 24, %v1359_v19  ;;  %v288_v23 = vadd.s32 16, %v1359_v19 }
   0x9   :  { %v41_v12 = vld [vmem:[%s1413_s0 + $0x30] sm:$0xff]  ;;  %v40_v13 = vld [vmem:[%s1413_s0 + $0x28] sm:$0xff]  ;;  %v39_v14 = vld [vmem:[%s1413_s0 + $0x20] sm:$0xff]  ;;  %1061 = vset.pattern.permute.xlu0 %v1080_v18  ;;  %v291_v29 = vadd.s32 40, %v1359_v19  ;;  %v290_v32 = vadd.s32 32, %v1359_v19  ;;  %v293_v39 = vadd.s32 56, %v1359_v19 }
   0xa   :  { %960 = vmatpush3.xpose.msk.msra.mxu0 %vm56_vm0, %v1116_v3  ;;  %1030 = vmatpush3.xpose.msk.msra.mxu1 %vm56_vm0, %v1116_v3  ;;  %v38_v15 = vld [vmem:[%s1413_s0 + $0x18] sm:$0xff]  ;;  %v37_v16 = vld [vmem:[%s1413_s0 + $0x10] sm:$0xff]  ;;  %v36_v17 = vld [vmem:[%s1413_s0 + $0x8] sm:$0xff]  ;;  %vm303_vm1 = vcmp.eq.s32.totalorder %v287_v20, %v1110_v2  ;;  %vm305_vm3 = vcmp.eq.s32.totalorder %v289_v22, %v1110_v2  ;;  %vm304_vm4 = vcmp.eq.s32.totalorder %v288_v23, %v1110_v2  ;;  %v292_v40 = vadd.s32 48, %v1359_v19 }
   0xb   :  { %961 = vmatprep.subr.msk.mxu0 %vm56_vm0, %v1147_v6  ;;  %1015 = vmatprep.subr.msk.mxu1 %vm56_vm0, %v1147_v6  ;;  %vm307_vm5 = vcmp.eq.s32.totalorder %v291_v29, %v1110_v2  ;;  %vm306_vm6 = vcmp.eq.s32.totalorder %v290_v32, %v1110_v2  ;;  %v294_v43 = vadd.s32 64, %v1359_v19  ;;  %vm309_vm7 = vcmp.eq.s32.totalorder %v293_v39, %v1110_v2 }
   0xc   :  { %vm308_vm8 = vcmp.eq.s32.totalorder %v292_v40, %v1110_v2  ;;  %v295_v49 = vadd.s32 72, %v1359_v19  ;;  %v296_v52 = vadd.s32 80, %v1359_v19  ;;  %v297_v57 = vadd.s32 88, %v1359_v19 }
   0xd   :  { %vm310_vm9 = vcmp.eq.s32.totalorder %v294_v43, %v1110_v2  ;;  %v298_v61 = vadd.s32 96, %v1359_v19  ;;  %v299_v0 = vadd.s32 104, %v1359_v19 }
   0xe   :  { %962 = vmatpush3.xpose.msk.msra.mxu0 %vm56_vm0, %v1147_v6  ;;  %1031 = vmatpush3.xpose.msk.msra.mxu1 %vm56_vm0, %v1147_v6  ;;  %vm311_vm10 = vcmp.eq.s32.totalorder %v295_v49, %v1110_v2  ;;  %vm312_vm11 = vcmp.eq.s32.totalorder %v296_v52, %v1110_v2  ;;  %vm313_vm12 = vcmp.eq.s32.totalorder %v297_v57, %v1110_v2 }
   0xf   :  { %963 = vmatprep.subr.msk.mxu0 %vm56_vm0, %v1169_v7  ;;  %1016 = vmatprep.subr.msk.mxu1 %vm56_vm0, %v1169_v7  ;;  %vm314_vm13 = vcmp.eq.s32.totalorder %v298_v61, %v1110_v2  ;;  %vm315_vm14 = vcmp.eq.s32.totalorder %v299_v0, %v1110_v2 }
  0x12   :  { %964 = vmatpush3.xpose.msk.msra.mxu0 %vm56_vm0, %v1169_v7  ;;  %1032 = vmatpush3.xpose.msk.msra.mxu1 %vm56_vm0, %v1169_v7 }
  0x13   :  { %965 = vmatprep.subr.msk.mxu0 %vm56_vm0, %v1186_v8  ;;  %1017 = vmatprep.subr.msk.mxu1 %vm56_vm0, %v1186_v8 }
  0x16   :  { %966 = vmatpush3.xpose.msk.msra.mxu0 %vm56_vm0, %v1186_v8  ;;  %1033 = vmatpush3.xpose.msk.msra.mxu1 %vm56_vm0, %v1186_v8 }
  0x17   :  { %967 = vmatprep.subr.msk.mxu0 %vm56_vm0, %v45_v9  ;;  %1018 = vmatprep.subr.msk.mxu1 %vm56_vm0, %v45_v9 }
  0x1a   :  { %968 = vmatpush3.xpose.msk.msra.mxu0 %vm56_vm0, %v45_v9  ;;  %1034 = vmatpush3.xpose.msk.msra.mxu1 %vm56_vm0, %v45_v9 }
  0x1b   :  { %969 = vmatprep.subr.msk.mxu0 %vm56_vm0, %v44_v10  ;;  %1019 = vmatprep.subr.msk.mxu1 %vm56_vm0, %v44_v10 }
  0x1e   :  { %970 = vmatpush3.xpose.msk.msra.mxu0 %vm56_vm0, %v44_v10  ;;  %1035 = vmatpush3.xpose.msk.msra.mxu1 %vm56_vm0, %v44_v10 }
  0x1f   :  { %971 = vmatprep.subr.msk.mxu0 %vm56_vm0, %v43_v4  ;;  %1020 = vmatprep.subr.msk.mxu1 %vm56_vm0, %v43_v4 }
  0x22   :  { %972 = vmatpush3.xpose.msk.msra.mxu0 %vm56_vm0, %v43_v4  ;;  %1036 = vmatpush3.xpose.msk.msra.mxu1 %vm56_vm0, %v43_v4 }
  0x23   :  { %973 = vmatprep.subr.msk.mxu0 %vm56_vm0, %v42_v11  ;;  %1021 = vmatprep.subr.msk.mxu1 %vm56_vm0, %v42_v11 }
  0x26   :  { %974 = vmatpush3.xpose.msk.msra.mxu0 %vm56_vm0, %v42_v11  ;;  %1037 = vmatpush3.xpose.msk.msra.mxu1 %vm56_vm0, %v42_v11 }
  0x27   :  { %975 = vmatprep.subr.msk.mxu0 %vm56_vm0, %v41_v12  ;;  %1022 = vmatprep.subr.msk.mxu1 %vm56_vm0, %v41_v12 }
  0x2a   :  { %976 = vmatpush3.xpose.msk.msra.mxu0 %vm56_vm0, %v41_v12  ;;  %1038 = vmatpush3.xpose.msk.msra.mxu1 %vm56_vm0, %v41_v12 }
  0x2b   :  { %977 = vmatprep.subr.msk.mxu0 %vm56_vm0, %v40_v13  ;;  %1023 = vmatprep.subr.msk.mxu1 %vm56_vm0, %v40_v13 }
  0x2e   :  { %978 = vmatpush3.xpose.msk.msra.mxu0 %vm56_vm0, %v40_v13  ;;  %1039 = vmatpush3.xpose.msk.msra.mxu1 %vm56_vm0, %v40_v13 }
  0x2f   :  { %979 = vmatprep.subr.msk.mxu0 %vm56_vm0, %v39_v14  ;;  %1024 = vmatprep.subr.msk.mxu1 %vm56_vm0, %v39_v14 }
  0x32   :  { %980 = vmatpush3.xpose.msk.msra.mxu0 %vm56_vm0, %v39_v14  ;;  %1040 = vmatpush3.xpose.msk.msra.mxu1 %vm56_vm0, %v39_v14 }
  0x33   :  { %981 = vmatprep.subr.msk.mxu0 %vm56_vm0, %v38_v15  ;;  %1025 = vmatprep.subr.msk.mxu1 %vm56_vm0, %v38_v15 }
  0x36   :  { %982 = vmatpush3.xpose.msk.msra.mxu0 %vm56_vm0, %v38_v15  ;;  %1041 = vmatpush3.xpose.msk.msra.mxu1 %vm56_vm0, %v38_v15 }
  0x37   :  { %983 = vmatprep.subr.msk.mxu0 %vm56_vm0, %v37_v16  ;;  %1026 = vmatprep.subr.msk.mxu1 %vm56_vm0, %v37_v16 }
  0x3a   :  { %984 = vmatpush3.xpose.msk.msra.mxu0 %vm56_vm0, %v37_v16  ;;  %1042 = vmatpush3.xpose.msk.msra.mxu1 %vm56_vm0, %v37_v16 }
  0x3b   :  { %985 = vmatprep.subr.msk.mxu0 %vm56_vm0, %v36_v17  ;;  %1027 = vmatprep.subr.msk.mxu1 %vm56_vm0, %v36_v17 }
  0x3e   :  { %986 = vmatpush3.xpose.msk.msra.mxu0 %vm56_vm0, %v36_v17  ;;  %1043 = vmatpush3.xpose.msk.msra.mxu1 %vm56_vm0, %v36_v17 }
  0x3f   :  { %987 = vmatprep.subr.msk.mxu0 %vm56_vm0, %v1142_v5  ;;  %1028 = vmatprep.subr.msk.mxu1 %vm56_vm0, %v1142_v5 }
  0x42   :  { %988 = vmatpush3.xpose.msk.msra.mxu0 %vm56_vm0, %v1142_v5  ;;  %1044 = vmatpush3.xpose.msk.msra.mxu1 %vm56_vm0, %v1142_v5  ;;  %v300_v5 = vadd.s32 112, %v1359_v19 }
  0x44   :  { %vm316_vm15 = vcmp.eq.s32.totalorder %v300_v5, %v1110_v2 }
  0x45   :  { %990 = vmatmul.mubr.msk.f32.vlgmr.msra.gmra.mxu0 %vm56_vm0, %v36_v17  ;;  %1002 = vmatmul.mubr.msk.f32.vlgmr.msra.gmra.mxu1 %vm56_vm0, %v44_v10 }
  0x46   :  { %992 = vmatprep.mubr.msk.f32.mxu0 %vm56_vm0, %v37_v16  ;;  %1004 = vmatprep.mubr.msk.f32.mxu1 %vm56_vm0, %v45_v9  ;;  %v301_v9 = vadd.s32 120, %v1359_v19 }
  0x49   :  { %993 = vmatmul.mubr.msk.f32.gmra.mxu0 %vm56_vm0, %v38_v15  ;;  %1005 = vmatmul.mubr.msk.f32.gmra.mxu1 %vm56_vm0, %v1186_v8 }
  0x4a   :  { %995 = vmatprep.mubr.msk.f32.mxu0 %vm56_vm0, %v39_v14  ;;  %1007 = vmatprep.mubr.msk.f32.mxu1 %vm56_vm0, %v1169_v7  ;;  %v486_v7 = vld [vmem:[%s1414_s1] sm:$0xff] }
  0x4d   :  { %996 = vmatmul.mubr.msk.f32.gmra.mxu0 %vm56_vm0, %v40_v13  ;;  %1008 = vmatmul.mubr.msk.f32.gmra.mxu1 %vm56_vm0, %v1147_v6 }
  0x4e   :  { %998 = vmatprep.mubr.msk.f32.mxu0 %vm56_vm0, %v41_v12  ;;  %1010 = vmatprep.mubr.msk.f32.mxu1 %vm56_vm0, %v1116_v3 }
  0x51   :  { %999 = vmatmul.mubr.msk.f32.gmra.mxu0 %vm56_vm0, %v42_v11  ;;  %1011 = vmatmul.mubr.msk.f32.gmra.mxu1 %vm56_vm0, %v1107_v1  ;;  %vm317_vm0 = vcmp.eq.s32.totalorder %v301_v9, %v1110_v2 }
 0x105   :  { %v991_v21 = vpop.f32.mrf.mxu0  ;;  %v1003_v24 = vpop.f32.mrf.mxu1 }
 0x106   :  { %v352_v25 = vsel %vm303_vm1, %v991_v21, 0.0  ;;  %v360_v62 = vsel %vm311_vm10, %v1003_v24, 0.0  ;;  %vm1081_vm1 = vmmov 1  }
 0x107   :  { %v1367_v26 = vpop.f32.mrf.mxu0  ;;  %v195_v27 = vpop.f32.mrf.mxu1 }
 0x108   :  { %v351_v28 = vsel %vm302_vm2, %v1367_v26, 0.0  ;;  %v359_v58 = vsel %vm310_vm9, %v195_v27, 0.0 }
 0x109   :  { %367 = vadd.xlane.f32.xlu0 %v351_v28  ;;  %v399_v30 = vadd.f32 %v352_v25, %v351_v28  ;;  %v994_v31 = vpop.f32.mrf.mxu0  ;;  %v1006_v34 = vpop.f32.mrf.mxu1 }
 0x10a   :  { %v354_v35 = vsel %vm305_vm3, %v994_v31, 0.0  ;;  %v362_v6 = vsel %vm313_vm12, %v1006_v34, 0.0  ;;  %v922_v31 = vld [vmem:[%s1415_s2] ss:$0 sm:$0xff]  ;;  %vm571_vm3 = vmxor %vm302_vm2, %vm1081_vm1 }
 0x10b   :  { %v165_v33 = vpop.f32.mrf.mxu0  ;;  %v205_v44 = vpop.f32.mrf.mxu1 }
 0x10c   :  { %v353_v36 = vsel %vm304_vm4, %v165_v33, 0.0  ;;  %v361_v1 = vsel %vm312_vm11, %v205_v44, 0.0  ;;  %v1082_v33 = vmov 0.0  }
 0x10d   :  { %v400_v37 = vadd.f32 %v399_v30, %v353_v36  ;;  %v997_v38 = vpop.f32.mrf.mxu0  ;;  %v1009_v53 = vpop.f32.mrf.mxu1 }
 0x10e   :  { %v356_v45 = vsel %vm307_vm5, %v997_v38, 0.0  ;;  %v364_v13 = vsel %vm315_vm14, %v1009_v53, 0.0  ;;  %vm334_vm5 = vcmp.lt.s32.totalorder %v1110_v2, 8 }
 0x10f   :  { %v175_v41 = vpop.f32.mrf.mxu0  ;;  %v401_v42 = vadd.f32 %v400_v37, %v354_v35  ;;  %v215_v60 = vpop.f32.mrf.mxu1 }
 0x110   :  { %v355_v46 = vsel %vm306_vm6, %v175_v41, 0.0  ;;  %v363_v10 = vsel %vm314_vm13, %v215_v60, 0.0 }
 0x111   :  { %v402_v47 = vadd.f32 %v401_v42, %v355_v46  ;;  %v1000_v48 = vpop.f32.mrf.mxu0  ;;  %v1012_v4 = vpop.f32.mrf.mxu1 }
 0x112   :  { %v358_v54 = vsel %vm309_vm7, %v1000_v48, 0.0  ;;  %v366_v17 = vsel %vm317_vm0, %v1012_v4, 0.0 }
 0x113   :  { %v185_v50 = vpop.f32.mrf.mxu0  ;;  %v403_v51 = vadd.f32 %v402_v47, %v356_v45  ;;  %v225_v12 = vpop.f32.mrf.mxu1 }
 0x114   :  { %v357_v55 = vsel %vm308_vm8, %v185_v50, 0.0  ;;  %v365_v15 = vsel %vm316_vm15, %v225_v12, 0.0 }
 0x115   :  { %v404_v56 = vadd.f32 %v403_v51, %v357_v55 }
 0x117   :  { %v405_v59 = vadd.f32 %v404_v56, %v358_v54 }
 0x119   :  { %v406_v63 = vadd.f32 %v405_v59, %v359_v58 }
 0x11b   :  { %v407_v3 = vadd.f32 %v406_v63, %v360_v62 }
 0x11d   :  { %v408_v8 = vadd.f32 %v407_v3, %v361_v1 }
 0x11f   :  { %v409_v11 = vadd.f32 %v408_v8, %v362_v6  ;;  %504 = vperm.xlu0 %1061, %v486_v7  }
 0x121   :  { %v410_v14 = vadd.f32 %v409_v11, %v363_v10 }
 0x123   :  { %v411_v16 = vadd.f32 %v410_v14, %v364_v13 }
 0x125   :  { %v412_v18 = vadd.f32 %v411_v16, %v365_v15 }
 0x127   :  { %v413_v20 = vadd.f32 %v412_v18, %v366_v17 }
 0x129   :  { %v414_v21 = vrot.slane %v413_v20, 4 }
 0x12b   :  { %v415_v22 = vadd.f32 %v414_v21, %v413_v20 }
 0x12d   :  { %v416_v23 = vrot.slane %v415_v22, 2 }
 0x12f   :  { %v417_v24 = vadd.f32 %v416_v23, %v415_v22 }
 0x131   :  { %v418_v25 = vrot.slane %v417_v24, 1 }
 0x133   :  { %v419_v27 = vadd.f32 %v418_v25, %v417_v24 }
 0x135   :  { %v452_v29 = vmax.f32 %v419_v27, 1e-24 }
 0x192   :  { %v368_v28 = vpop.xlane.xlu0 %367 }
 0x193   :  { %v420_v30 = vmax.f32 %v368_v28, 1e-24 }
 0x195   :  { %1062 = vrsqrt.f32 %v420_v30 }
 0x196   :  { %1064 = vrsqrt.f32 %v452_v29 }
 0x19a   :  { %v505_v32 = vpop.permute.xlu0 %504 }
 0x19b   :  { %vm555_vm4 = vcmp.eq.s32.totalorder %v505_v32, %v922_v31 }
 0x19c   :  { %vm587_vm6 = vmand %vm555_vm4, %vm571_vm3 }
 0x19d   :  { %vm603_vm7 = vmand %vm587_vm6, %vm334_vm5 }
 0x19e   :  { %v923_v34 = vsel %vm603_vm7, 1.0, %v1082_v33  ;;  %vm619_vm8 = vmxor %vm555_vm4, %vm1081_vm1 }
 0x19f   :  { %794 = vadd.xlane.f32.xlu1 %v923_v34  ;;  %vm635_vm9 = vmand %vm619_vm8, %vm334_vm5 }
 0x1a0   :  { %v924_v41 = vsel %vm635_vm9, 1.0, %v1082_v33 }
 0x1a2   :  { %v1063_v35 = vpop.eup %1062 }
 0x1a3   :  { %v454_v36 = vmul.f32 %v1063_v35, %v1367_v26  ;;  %v1065_v37 = vpop.eup %1064 }
 0x1a5   :  { %v470_v38 = vmul.f32 %v1065_v37, %v454_v36 }
 0x1a7   :  { %v651_v39 = vsel %vm603_vm7, %v470_v38, 0.0  ;;  %v691_v40 = vand.u32 2147483647, %v470_v38 }
 0x1a8   :  { %682 = vadd.xlane.f32.xlu1 %v651_v39 }
 0x1a9   :  { %v707_v19 = vsel %vm635_vm9, %v691_v40, 0.0 }
 0x1ac   :  { %738 = vadd.xlane.f32.xlu1 %v707_v19 }
 0x1b0   :  { %850 = vadd.xlane.f32.xlu1 %v924_v41 }
 0x228   :  { %v795_v2 = vpop.xlane.xlu1 %794 }
 0x229   :  { %v796_v42 = vrot.slane %v795_v2, 4 }
 0x22b   :  { %v797_v43 = vadd.f32 %v796_v42, %v795_v2 }
 0x22d   :  { %v798_v47 = vrot.slane %v797_v43, 2 }
 0x22f   :  { %v799_v53 = vadd.f32 %v798_v47, %v797_v43 }
 0x231   :  { %v683_v44 = vpop.xlane.xlu1 %682  ;;  %v800_v60 = vrot.slane %v799_v53, 1 }
 0x232   :  { %v684_v45 = vrot.slane %v683_v44, 4 }
 0x233   :  { %v801_v1 = vadd.f32 %v800_v60, %v799_v53 }
 0x234   :  { %v685_v46 = vadd.f32 %v684_v45, %v683_v44 }
 0x235   :  { %v739_v48 = vpop.xlane.xlu1 %738 }
 0x236   :  { %v686_v26 = vrot.slane %v685_v46, 2  ;;  %v740_v49 = vrot.slane %v739_v48, 4 }
 0x238   :  { %v741_v50 = vadd.f32 %v740_v49, %v739_v48  ;;  %v687_v51 = vadd.f32 %v686_v26, %v685_v46 }
 0x239   :  { %v851_v52 = vpop.xlane.xlu1 %850 }
 0x23a   :  { %v742_v54 = vrot.slane %v741_v50, 2  ;;  %v852_v55 = vrot.slane %v851_v52, 4  ;;  %v688_v56 = vrot.slane %v687_v51, 1 }
 0x23c   :  { %v853_v57 = vadd.f32 %v852_v55, %v851_v52  ;;  %v689_v58 = vadd.f32 %v688_v56, %v687_v51  ;;  %v743_v59 = vadd.f32 %v742_v54, %v741_v50 }
 0x23e   :  { %v854_v61 = vrot.slane %v853_v57, 2  ;;  %1045 = vpush %v689_v58  ;;  %v744_v62 = vrot.slane %v743_v59, 1 }
 0x240   :  { %v855_v63 = vadd.f32 %v854_v61, %v853_v57  ;;  %v745_v0 = vadd.f32 %v744_v62, %v743_v59 }
 0x242   :  { %1047 = vpush %v745_v0  ;;  %v856_v3 = vrot.slane %v855_v63, 1 }
 0x243   :  { %1049 = vpush %v801_v1 }
 0x244   :  { %v857_v4 = vadd.f32 %v856_v3, %v855_v63 }
 0x246   :  { %1051 = vpush %v857_v4 }
 0x26f   :  { %s1046_s2 = spop %1045 }
 0x273   :  { %s1048_s19 = spop %1047 }
 0x274   :  { %s1050_s20 = spop %1049 }
 0x275   :  { %s859_s21 = sadd.f32 1e-06, %s1050_s20 }
 0x277   :  { %v860_v5 = vstv %s859_s21  ;;  %s1052_s22 = spop %1051 }
 0x278   :  { %1066 = vrcp.f32 %v860_v5  ;;  %s864_s23 = sadd.f32 1e-06, %s1052_s22 }
 0x27a   :  { %v865_v6 = vstv %s864_s23 }
 0x27b   :  { %1068 = vrcp.f32 %v865_v6 }
 0x285   :  { %v1067_v7 = vpop.eup %1066 }
 0x286   :  { %1053 = vpush %v1067_v7 }
 0x288   :  { %v1069_v8 = vpop.eup %1068 }
 0x289   :  { %1055 = vpush %v1069_v8 }
 0x2b7   :  { %s1054_s24 = spop %1053 }
 0x2b8   :  { %s863_s25 = smul.f32 %s1054_s24, %s1046_s2 }
 0x2ba   :  { %s869_s26 = ssub.f32 1.0, %s863_s25  ;;  %s1056_s27 = spop %1055 }
 0x2bb   :  { %874 = sst [smem:[#allocation3 + $0x1]] %s863_s25  ;;  %s868_s28 = smul.f32 %s1056_s27, %s1048_s19 }
 0x2bd   :  { %s870_s29 = sadd.f32 %s869_s26, %s868_s28 }
 0x2be   :  { %876 = sst [smem:[#allocation3 + $0x2]] %s868_s28 }
 0x2bf   :  { %872 = sst [smem:[#allocation3]] %s870_s29 }
 0x2c0   :  { %884 = dma.smem_to_hbm %s1083_s30, 16, %s1416_s3, [#allocation4]  }
 0x2c1   :  { %1078 = dma.done.wait [#allocation4], 16  }
 0x2c2   :  { %1079 = vsyncadd [#allocation4], 4294967280 }
 0x2c3   :  { %888 = sfence }
 0x2c4   :  { %889 = vsyncpa [#allocation4], 1 }

</bundles_post_ra>
